<compile_context>
chip_gen: v6e
topology: v6e:2x2x1
jax: 0.10.0
libtpu: 0.0.40
codegen_flags: <defaults>
</compile_context>

<pallas_src>
import math

import jax
import jax.numpy as jnp
from jax.experimental import pallas as pl
from jax.experimental.pallas import tpu as pltpu

IN_LEN = 1024   # forced by Linear(342, .) after AvgPool1d(3, stride=3, padding=1)
POOLED = 342
HIDDEN = 128


def _round_up(a, m):
    return (a + m - 1) // m * m


def fold_pool_into_w1(w1):
    """Fold AvgPool1d(3, stride=3, padding=1) into the (342, 128) dense weight.

    Window j averages original indices {3j-1, 3j, 3j+1} (pad taps contribute 0,
    divisor stays 3 -> count_include_pad=True).  Each original index k belongs to
    exactly one window j = (k+1)//3, so the pool folds exactly into the weight:
        W1'[k, :] = w1[(k+1)//3, :] / 3,   shape (1024, 128).
    """
    wrep = jnp.repeat(w1 / 3.0, 3, axis=0)     # (1026, 128), rows = padded positions
    return wrep[1:IN_LEN + 1]                   # drop the two pad taps -> (1024, 128)


def collapse_weights(w1, b1, w2, b2):
    """Collapse pool + Linear(342,128) + Linear(128,1) into one (1024,1) vector.

    At inference dropout is identity and there is no nonlinearity between the two
    Linears, so y = (x @ W1' + b1) @ w2 + b2 = x @ (W1' @ w2) + (b1 @ w2 + b2).
    """
    hi = jax.lax.Precision.HIGHEST
    w1f = fold_pool_into_w1(w1)                                        # (1024, 128)
    w_eff = jnp.dot(w1f, w2, precision=hi)                             # (1024, 1)
    b_eff = jnp.dot(b1.reshape(1, HIDDEN), w2, precision=hi) + b2.reshape(1, 1)
    return w_eff.astype(jnp.float32), b_eff.astype(jnp.float32)


def kamil_kernel(x_ref, w_ref, b_ref, out_ref):
    # x_ref : (TB, 1024) activation tile (pool + both Linears folded into w_ref)
    # w_ref : (1024, 1) collapsed weight (resident), b_ref: (1, 1) collapsed bias
    # out_ref: (TB, 1) f32
    # TODO(synk): the two Dropout(0.35) layers are identity in eval mode;
    # training-mode stochastic dropout is not implemented.
    y = jnp.dot(x_ref[...], w_ref[...], preferred_element_type=jnp.float32)
    out_ref[...] = jax.nn.sigmoid(y + b_ref[...])


def kamil_forward(x, w1, b1, w2, b2, *, block_rows=2048,
                  vmem_limit_bytes=48 * 1024 * 1024):
    """x: (N, C, 1024) -> (N, C, 1) f32.  Weights stored as (in, out) = W^T of PyTorch."""
    N, C, L = x.shape
    assert L == IN_LEN, f"expected L={IN_LEN}, got {L}"
    B = N * C

    w_eff, b_eff = collapse_weights(w1, b1, w2, b2)
    w_eff = w_eff.astype(x.dtype)      # stream the weight in the activation dtype

    # Stream activations straight from the caller's layout: reshape only
    # (no dtype cast, no pad-to-a-full-tile), so the kernel is the single HBM pass.
    xf = x.reshape(B, L)
    sub = 8 if x.dtype == jnp.float32 else 16       # sublane multiple
    Bp = _round_up(B, sub)                          # pad rows only to a sublane multiple
    if Bp != B:
        xf = jnp.pad(xf, ((0, Bp - B), (0, 0)))

    # Row tile: sublane-multiple, capped so the f32 double-buffer fits v7x's
    # 64 MiB VMEM; split into >=2 tiles when possible so both v7x TensorCores
    # get work.  The last tile may be ragged; Pallas clips out-of-range rows
    # (reads are row-independent, out-of-range writes are dropped).
    TB = _round_up(min(block_rows, Bp), sub)
    if Bp > sub and pl.cdiv(Bp, TB) < 2:
        TB = _round_up(pl.cdiv(Bp, 2), sub)
    num_tiles = pl.cdiv(Bp, TB)

    out = pl.pallas_call(
        kamil_kernel,
        out_shape=jax.ShapeDtypeStruct((Bp, 1), jnp.float32),
        grid=(num_tiles,),
        in_specs=[
            pl.BlockSpec((TB, IN_LEN), lambda i: (i, 0)),   # activation tile
            pl.BlockSpec((IN_LEN, 1), lambda i: (0, 0)),    # collapsed weight (resident)
            pl.BlockSpec((1, 1), lambda i: (0, 0)),         # collapsed bias
        ],
        out_specs=pl.BlockSpec((TB, 1), lambda i: (i, 0)),
        compiler_params=pltpu.CompilerParams(
            dimension_semantics=("parallel",),
            vmem_limit_bytes=vmem_limit_bytes,
        ),
    )(xf, w_eff, b_eff)

    return out[:B].reshape(N, C, 1)


def reference_forward(x, w1, b1, w2, b2):
    N, C, L = x.shape
    hi = jax.lax.Precision.HIGHEST
    xf = x.reshape(N * C, L)
    xpad = jnp.pad(xf, ((0, 0), (1, 1)))
    pooled = xpad.reshape(N * C, POOLED, 3).mean(axis=-1)
    h = jnp.dot(pooled, w1, precision=hi) + b1
    y = jnp.dot(h, w2, precision=hi) + b2
    return jax.nn.sigmoid(y).reshape(N, C, 1)


if __name__ == "__main__":
    key = jax.random.PRNGKey(0)
    k1, k2, k3, k4, k5, k6 = jax.random.split(key, 6)

    # PyTorch Linear-style uniform(-1/sqrt(in), 1/sqrt(in)) init; weights stored
    # as (in_features, out_features), i.e. W^T of PyTorch's layout.
    lim1 = 1.0 / math.sqrt(POOLED)
    w1 = jax.random.uniform(k1, (POOLED, HIDDEN), jnp.float32, -lim1, lim1)
    b1 = jax.random.uniform(k2, (HIDDEN,), jnp.float32, -lim1, lim1)
    lim2 = 1.0 / math.sqrt(HIDDEN)
    w2 = jax.random.uniform(k3, (HIDDEN, 1), jnp.float32, -lim2, lim2)
    b2 = jax.random.uniform(k4, (1,), jnp.float32, -lim2, lim2)

    # Small example: batch=2, channels=4, seq len 1024 (forced by Linear(342, .)).
    x = jax.random.normal(k5, (2, 4, IN_LEN), jnp.float32)
    ref = reference_forward(x, w1, b1, w2, b2)
    out = jax.block_until_ready(kamil_forward(x, w1, b1, w2, b2))
    assert out.shape == (2, 4, 1), out.shape
    assert jnp.allclose(out, ref, atol=1e-4, rtol=0.0), "mismatch vs reference"

    # Awkward row count (21 rows): exercises the >=2-tile split for v7x and the
    # ragged (clipped) last tile instead of padding B up to a full tile.
    x2 = jax.random.normal(k6, (3, 7, IN_LEN), jnp.float32)
    ref2 = reference_forward(x2, w1, b1, w2, b2)
    out2 = jax.block_until_ready(kamil_forward(x2, w1, b1, w2, b2))
    assert out2.shape == (3, 7, 1), out2.shape
    assert jnp.allclose(out2, ref2, atol=1e-4, rtol=0.0), "ragged-tile mismatch vs reference"

    print("KERNEL_OK")
</pallas_src>

<mosaic_0001>
module attributes {stable_mosaic.version = 11 : i64} {
  func.func @kamil_kernel(%arg0: i32, %arg1: memref<8x1024xf32, #tpu.memory_space<vmem>>, %arg2: memref<1024x1xf32, #tpu.memory_space<vmem>>, %arg3: memref<1x1xf32, #tpu.memory_space<vmem>>, %arg4: memref<8x1xf32, #tpu.memory_space<vmem>>) attributes {dimension_semantics = [#tpu.dimension_semantics<parallel>], iteration_bounds = array<i64: 1>, scalar_prefetch = 0 : i64, scratch_operands = 0 : i64, tpu.core_type = #tpu.core_type<tc>, window_params = [{transform_indices = @transform_0, window_bounds = array<i64: 8, 1024>}, {pipeline_mode = #tpu.pipeline_mode<synchronous>, transform_indices = @transform_1, window_bounds = array<i64: 1024, 1>}, {pipeline_mode = #tpu.pipeline_mode<synchronous>, transform_indices = @transform_2, window_bounds = array<i64: 1, 1>}, {transform_indices = @transform_3, window_bounds = array<i64: 8, 1>}]} {
    %c0 = arith.constant 0 : index
    %c0_0 = arith.constant 0 : index
    %0 = vector.load %arg1[%c0, %c0_0] : memref<8x1024xf32, #tpu.memory_space<vmem>>, vector<8x1024xf32>
    %c0_1 = arith.constant 0 : index
    %c0_2 = arith.constant 0 : index
    %1 = vector.load %arg2[%c0_1, %c0_2] : memref<1024x1xf32, #tpu.memory_space<vmem>>, vector<1024x1xf32>
    %cst = arith.constant dense<0.000000e+00> : vector<8x1xf32>
    %2 = tpu.matmul %0, %1, %cst {dimension_numbers = #tpu.dot_dimension_numbers<[1], [0], [0], [1], [0, 0, 1, 1], [], []>} : vector<8x1024xf32>, vector<1024x1xf32>, vector<8x1xf32> -> vector<8x1xf32>
    %c0_3 = arith.constant 0 : index
    %c0_4 = arith.constant 0 : index
    %3 = vector.load %arg3[%c0_3, %c0_4] : memref<1x1xf32, #tpu.memory_space<vmem>>, vector<1x1xf32>
    %4 = vector.broadcast %3 : vector<1x1xf32> to vector<8x1xf32>
    %5 = arith.addf %2, %4 : vector<8x1xf32>
    %6 = arith.negf %5 : vector<8x1xf32>
    %7 = math.exp %6 : vector<8x1xf32>
    %cst_5 = arith.constant 1.000000e+00 : f32
    %8 = vector.broadcast %cst_5 : f32 to vector<8x1xf32>
    %9 = arith.addf %8, %7 : vector<8x1xf32>
    %10 = arith.divf %8, %9 : vector<8x1xf32>
    %c0_6 = arith.constant 0 : index
    %c0_7 = arith.constant 0 : index
    %11 = vector.load %arg4[%c0_6, %c0_7] : memref<8x1xf32, #tpu.memory_space<vmem>>, vector<8x1xf32>
    tpu.vector_store %arg4[%c0_6, %c0_7], %10 {strides = array<i32>} : memref<8x1xf32, #tpu.memory_space<vmem>>, vector<8x1xf32>,
    return
  }
  func.func @transform_0(%arg0: i32) -> (i32, i32) {
    %c0_i32 = arith.constant 0 : i32
    %c0_i32_0 = arith.constant 0 : i32
    return %arg0, %c0_i32 : i32, i32
  }
  func.func @transform_1(%arg0: i32) -> (i32, i32) {
    %c0_i32 = arith.constant 0 : i32
    %c0_i32_0 = arith.constant 0 : i32
    %c0_i32_1 = arith.constant 0 : i32
    return %c0_i32, %c0_i32_0 : i32, i32
  }
  func.func @transform_2(%arg0: i32) -> (i32, i32) {
    %c0_i32 = arith.constant 0 : i32
    %c0_i32_0 = arith.constant 0 : i32
    %c0_i32_1 = arith.constant 0 : i32
    return %c0_i32, %c0_i32_0 : i32, i32
  }
  func.func @transform_3(%arg0: i32) -> (i32, i32) {
    %c0_i32 = arith.constant 0 : i32
    %c0_i32_0 = arith.constant 0 : i32
    return %arg0, %c0_i32 : i32, i32
  }
}

</mosaic_0001>

<bundles_post_ra>
// kernel: tpu_custom_call.1
= control target key start
LH: loop header
LB: loop body
LE: loop exit
PB: predicated region body
PF: predicated region fallthrough
CT: control target
= control target key end

     0   :  { %vm445_vm0 = vcmask 7168   ;;  %s1031_s1 = inlined_call_operand.vmem [shape: f32[1024,1], index: 1, kind: input, shape index: {}]   ;;  %s1032_s0 = inlined_call_operand.vmem [shape: f32[8,1024], index: 0, kind: input, shape index: {}]   ;;  %s1033_s2 = inlined_call_operand.<no memory space> [shape: f32[1,1], index: 2, kind: input, shape index: {}]   ;;  %s1034_s3 = inlined_call_operand.vmem [shape: f32[8,1], index: 3, kind: output, shape index: {}]  }
   0x1   :  { %v55_v0 = vld [vmem:[%s1031_s1 + $0xf8] sm:$0xff]  ;;  %v54_v4 = vld [vmem:[%s1031_s1 + $0xf0] sm:$0xff]  ;;  %v53_v8 = vld [vmem:[%s1031_s1 + $0xe8] sm:$0xff] }
   0x2   :  { %v87_v1 = vld [vmem:[%s1031_s1 + $0x1f8] sm:$0xff]  ;;  %453 = vmatprep.subr.mxu0 %v55_v0  ;;  %v86_v5 = vld [vmem:[%s1031_s1 + $0x1f0] sm:$0xff]  ;;  %v85_v9 = vld [vmem:[%s1031_s1 + $0x1e8] sm:$0xff] }
   0x3   :  { %v39_v2 = vld [vmem:[%s1031_s1 + $0x78] sm:$0xff]  ;;  %488 = vmatprep.subr.mxu1 %v87_v1  ;;  %v38_v6 = vld [vmem:[%s1031_s1 + $0x70] sm:$0xff]  ;;  %v37_v10 = vld [vmem:[%s1031_s1 + $0x68] sm:$0xff] }
   0x4   :  { %v71_v3 = vld [vmem:[%s1031_s1 + $0x178] sm:$0xff]  ;;  %454 = vmatpush3.msra.mxu0 %v39_v2  ;;  %v70_v7 = vld [vmem:[%s1031_s1 + $0x170] sm:$0xff]  ;;  %v69_v11 = vld [vmem:[%s1031_s1 + $0x168] sm:$0xff] }
   0x5   :  { %489 = vmatpush3.msra.mxu1 %v71_v3  ;;  %455 = vmatprep.subr.mxu0 %v54_v4  ;;  %v52_v12 = vld [vmem:[%s1031_s1 + $0xe0] sm:$0xff]  ;;  %v51_v16 = vld [vmem:[%s1031_s1 + $0xd8] sm:$0xff]  ;;  %v50_v20 = vld [vmem:[%s1031_s1 + $0xd0] sm:$0xff] }
   0x6   :  { %490 = vmatprep.subr.mxu1 %v86_v5  ;;  %456 = vmatpush3.msra.mxu0 %v38_v6  ;;  %v84_v13 = vld [vmem:[%s1031_s1 + $0x1e0] sm:$0xff]  ;;  %v83_v17 = vld [vmem:[%s1031_s1 + $0x1d8] sm:$0xff]  ;;  %v82_v21 = vld [vmem:[%s1031_s1 + $0x1d0] sm:$0xff] }
   0x7   :  { %491 = vmatpush3.msra.mxu1 %v70_v7  ;;  %457 = vmatprep.subr.mxu0 %v53_v8  ;;  %v36_v14 = vld [vmem:[%s1031_s1 + $0x60] sm:$0xff]  ;;  %v35_v18 = vld [vmem:[%s1031_s1 + $0x58] sm:$0xff]  ;;  %v34_v22 = vld [vmem:[%s1031_s1 + $0x50] sm:$0xff] }
   0x8   :  { %492 = vmatprep.subr.mxu1 %v85_v9  ;;  %v68_v15 = vld [vmem:[%s1031_s1 + $0x160] sm:$0xff]  ;;  %458 = vmatpush3.msra.mxu0 %v37_v10  ;;  %v67_v19 = vld [vmem:[%s1031_s1 + $0x158] sm:$0xff]  ;;  %v66_v23 = vld [vmem:[%s1031_s1 + $0x150] sm:$0xff] }
   0x9   :  { %493 = vmatpush3.msra.mxu1 %v69_v11  ;;  %459 = vmatprep.subr.mxu0 %v52_v12  ;;  %v49_v24 = vld [vmem:[%s1031_s1 + $0xc8] sm:$0xff]  ;;  %v48_v28 = vld [vmem:[%s1031_s1 + $0xc0] sm:$0xff]  ;;  %v47_v32 = vld [vmem:[%s1031_s1 + $0xb8] sm:$0xff] }
   0xa   :  { %494 = vmatprep.subr.mxu1 %v84_v13  ;;  %460 = vmatpush3.msra.mxu0 %v36_v14  ;;  %v81_v25 = vld [vmem:[%s1031_s1 + $0x1c8] sm:$0xff]  ;;  %v80_v29 = vld [vmem:[%s1031_s1 + $0x1c0] sm:$0xff]  ;;  %v79_v33 = vld [vmem:[%s1031_s1 + $0x1b8] sm:$0xff] }
   0xb   :  { %495 = vmatpush3.msra.mxu1 %v68_v15  ;;  %461 = vmatprep.subr.mxu0 %v51_v16  ;;  %v33_v26 = vld [vmem:[%s1031_s1 + $0x48] sm:$0xff]  ;;  %v32_v30 = vld [vmem:[%s1031_s1 + $0x40] sm:$0xff]  ;;  %v31_v34 = vld [vmem:[%s1031_s1 + $0x38] sm:$0xff] }
   0xc   :  { %496 = vmatprep.subr.mxu1 %v83_v17  ;;  %462 = vmatpush3.msra.mxu0 %v35_v18  ;;  %v65_v27 = vld [vmem:[%s1031_s1 + $0x148] sm:$0xff]  ;;  %v64_v31 = vld [vmem:[%s1031_s1 + $0x140] sm:$0xff]  ;;  %v63_v35 = vld [vmem:[%s1031_s1 + $0x138] sm:$0xff] }
   0xd   :  { %497 = vmatpush3.msra.mxu1 %v67_v19  ;;  %463 = vmatprep.subr.mxu0 %v50_v20  ;;  %v46_v36 = vld [vmem:[%s1031_s1 + $0xb0] sm:$0xff]  ;;  %v45_v40 = vld [vmem:[%s1031_s1 + $0xa8] sm:$0xff]  ;;  %v44_v44 = vld [vmem:[%s1031_s1 + $0xa0] sm:$0xff] }
   0xe   :  { %498 = vmatprep.subr.mxu1 %v82_v21  ;;  %464 = vmatpush3.msra.mxu0 %v34_v22  ;;  %v78_v37 = vld [vmem:[%s1031_s1 + $0x1b0] sm:$0xff]  ;;  %v77_v41 = vld [vmem:[%s1031_s1 + $0x1a8] sm:$0xff]  ;;  %v76_v45 = vld [vmem:[%s1031_s1 + $0x1a0] sm:$0xff] }
   0xf   :  { %499 = vmatpush3.msra.mxu1 %v66_v23  ;;  %465 = vmatprep.subr.mxu0 %v49_v24  ;;  %v30_v38 = vld [vmem:[%s1031_s1 + $0x30] sm:$0xff]  ;;  %v29_v42 = vld [vmem:[%s1031_s1 + $0x28] sm:$0xff]  ;;  %v28_v46 = vld [vmem:[%s1031_s1 + $0x20] sm:$0xff] }
  0x10   :  { %500 = vmatprep.subr.mxu1 %v81_v25  ;;  %466 = vmatpush3.msra.mxu0 %v33_v26  ;;  %v62_v39 = vld [vmem:[%s1031_s1 + $0x130] sm:$0xff]  ;;  %v61_v43 = vld [vmem:[%s1031_s1 + $0x128] sm:$0xff]  ;;  %v60_v47 = vld [vmem:[%s1031_s1 + $0x120] sm:$0xff] }
  0x11   :  { %501 = vmatpush3.msra.mxu1 %v65_v27  ;;  %467 = vmatprep.subr.mxu0 %v48_v28  ;;  %v43_v48 = vld [vmem:[%s1031_s1 + $0x98] sm:$0xff]  ;;  %v42_v52 = vld [vmem:[%s1031_s1 + $0x90] sm:$0xff]  ;;  %v41_v56 = vld [vmem:[%s1031_s1 + $0x88] sm:$0xff] }
  0x12   :  { %502 = vmatprep.subr.mxu1 %v80_v29  ;;  %468 = vmatpush3.msra.mxu0 %v32_v30  ;;  %v75_v49 = vld [vmem:[%s1031_s1 + $0x198] sm:$0xff]  ;;  %v74_v53 = vld [vmem:[%s1031_s1 + $0x190] sm:$0xff]  ;;  %v73_v57 = vld [vmem:[%s1031_s1 + $0x188] sm:$0xff] }
  0x13   :  { %503 = vmatpush3.msra.mxu1 %v64_v31  ;;  %469 = vmatprep.subr.mxu0 %v47_v32  ;;  %v27_v50 = vld [vmem:[%s1031_s1 + $0x18] sm:$0xff]  ;;  %v26_v54 = vld [vmem:[%s1031_s1 + $0x10] sm:$0xff]  ;;  %v25_v58 = vld [vmem:[%s1031_s1 + $0x8] sm:$0xff] }
  0x14   :  { %504 = vmatprep.subr.mxu1 %v79_v33  ;;  %470 = vmatpush3.msra.mxu0 %v31_v34  ;;  %v59_v51 = vld [vmem:[%s1031_s1 + $0x118] sm:$0xff]  ;;  %v58_v55 = vld [vmem:[%s1031_s1 + $0x110] sm:$0xff]  ;;  %v57_v59 = vld [vmem:[%s1031_s1 + $0x108] sm:$0xff] }
  0x15   :  { %505 = vmatpush3.msra.mxu1 %v63_v35  ;;  %471 = vmatprep.subr.mxu0 %v46_v36  ;;  %v40_v60 = vld [vmem:[%s1031_s1 + $0x80] sm:$0xff]  ;;  %v17_v63 = vld [vmem:[%s1032_s0 + $0x8] sm:$0xff]  ;;  %v19_v2 = vld [vmem:[%s1032_s0 + $0x18] sm:$0xff] }
  0x16   :  { %506 = vmatprep.subr.mxu1 %v78_v37  ;;  %472 = vmatpush3.msra.mxu0 %v30_v38  ;;  %v72_v61 = vld [vmem:[%s1031_s1 + $0x180] sm:$0xff]  ;;  %v119_v3 = vld [vmem:[%s1031_s1 + $0x2f8] sm:$0xff]  ;;  %v18_v5 = vld [vmem:[%s1032_s0 + $0x10] sm:$0xff] }
  0x17   :  { %507 = vmatpush3.msra.mxu1 %v62_v39  ;;  %473 = vmatprep.subr.mxu0 %v45_v40  ;;  %v24_v62 = vld [vmem:[%s1031_s1] sm:$0xff]  ;;  %v151_v4 = vld [vmem:[%s1031_s1 + $0x3f8] sm:$0xff]  ;;  %v118_v8 = vld [vmem:[%s1031_s1 + $0x2f0] sm:$0xff] }
  0x18   :  { %508 = vmatprep.subr.mxu1 %v77_v41  ;;  %474 = vmatpush3.msra.mxu0 %v29_v42  ;;  %v56_v0 = vld [vmem:[%s1031_s1 + $0x100] sm:$0xff]  ;;  %v103_v6 = vld [vmem:[%s1031_s1 + $0x278] sm:$0xff]  ;;  %v150_v9 = vld [vmem:[%s1031_s1 + $0x3f0] sm:$0xff] }
  0x19   :  { %509 = vmatpush3.msra.mxu1 %v61_v43  ;;  %475 = vmatprep.subr.mxu0 %v44_v44  ;;  %v16_v1 = vld [vmem:[%s1032_s0] sm:$0xff]  ;;  %v135_v7 = vld [vmem:[%s1031_s1 + $0x378] sm:$0xff]  ;;  %v102_v10 = vld [vmem:[%s1031_s1 + $0x270] sm:$0xff] }
  0x1a   :  { %510 = vmatprep.subr.mxu1 %v76_v45  ;;  %476 = vmatpush3.msra.mxu0 %v28_v46  ;;  %v134_v11 = vld [vmem:[%s1031_s1 + $0x370] sm:$0xff]  ;;  %v117_v12 = vld [vmem:[%s1031_s1 + $0x2e8] sm:$0xff]  ;;  %v116_v16 = vld [vmem:[%s1031_s1 + $0x2e0] sm:$0xff] }
  0x1b   :  { %511 = vmatpush3.msra.mxu1 %v60_v47  ;;  %477 = vmatprep.subr.mxu0 %v43_v48  ;;  %v149_v13 = vld [vmem:[%s1031_s1 + $0x3e8] sm:$0xff]  ;;  %v148_v17 = vld [vmem:[%s1031_s1 + $0x3e0] sm:$0xff]  ;;  %v115_v20 = vld [vmem:[%s1031_s1 + $0x2d8] sm:$0xff] }
  0x1c   :  { %512 = vmatprep.subr.mxu1 %v75_v49  ;;  %478 = vmatpush3.msra.mxu0 %v27_v50  ;;  %v101_v14 = vld [vmem:[%s1031_s1 + $0x268] sm:$0xff]  ;;  %v100_v18 = vld [vmem:[%s1031_s1 + $0x260] sm:$0xff]  ;;  %v147_v21 = vld [vmem:[%s1031_s1 + $0x3d8] sm:$0xff] }
  0x1d   :  { %513 = vmatpush3.msra.mxu1 %v59_v51  ;;  %479 = vmatprep.subr.mxu0 %v42_v52  ;;  %v133_v15 = vld [vmem:[%s1031_s1 + $0x368] sm:$0xff]  ;;  %v132_v19 = vld [vmem:[%s1031_s1 + $0x360] sm:$0xff]  ;;  %v99_v22 = vld [vmem:[%s1031_s1 + $0x258] sm:$0xff] }
  0x1e   :  { %514 = vmatprep.subr.mxu1 %v74_v53  ;;  %480 = vmatpush3.msra.mxu0 %v26_v54  ;;  %v131_v23 = vld [vmem:[%s1031_s1 + $0x358] sm:$0xff]  ;;  %v114_v24 = vld [vmem:[%s1031_s1 + $0x2d0] sm:$0xff]  ;;  %v113_v28 = vld [vmem:[%s1031_s1 + $0x2c8] sm:$0xff] }
  0x1f   :  { %515 = vmatpush3.msra.mxu1 %v58_v55  ;;  %481 = vmatprep.subr.mxu0 %v41_v56  ;;  %v146_v25 = vld [vmem:[%s1031_s1 + $0x3d0] sm:$0xff]  ;;  %v145_v29 = vld [vmem:[%s1031_s1 + $0x3c8] sm:$0xff]  ;;  %v112_v32 = vld [vmem:[%s1031_s1 + $0x2c0] sm:$0xff] }
  0x20   :  { %516 = vmatprep.subr.mxu1 %v73_v57  ;;  %482 = vmatpush3.msra.mxu0 %v25_v58  ;;  %v98_v26 = vld [vmem:[%s1031_s1 + $0x250] sm:$0xff]  ;;  %v97_v30 = vld [vmem:[%s1031_s1 + $0x248] sm:$0xff]  ;;  %v144_v33 = vld [vmem:[%s1031_s1 + $0x3c0] sm:$0xff] }
  0x21   :  { %517 = vmatpush3.msra.mxu1 %v57_v59  ;;  %483 = vmatprep.subr.mxu0 %v40_v60  ;;  %v130_v27 = vld [vmem:[%s1031_s1 + $0x350] sm:$0xff]  ;;  %v129_v31 = vld [vmem:[%s1031_s1 + $0x348] sm:$0xff]  ;;  %v96_v34 = vld [vmem:[%s1031_s1 + $0x240] sm:$0xff] }
  0x22   :  { %518 = vmatprep.subr.mxu1 %v72_v61  ;;  %484 = vmatpush3.msra.mxu0 %v24_v62  ;;  %v128_v35 = vld [vmem:[%s1031_s1 + $0x340] sm:$0xff]  ;;  %v111_v36 = vld [vmem:[%s1031_s1 + $0x2b8] sm:$0xff]  ;;  %v110_v40 = vld [vmem:[%s1031_s1 + $0x2b0] sm:$0xff] }
  0x23   :  { %223 = vmatprep.mubr.f32.mxu0 %v17_v63  ;;  %519 = vmatpush3.msra.mxu1 %v56_v0  ;;  %v143_v37 = vld [vmem:[%s1031_s1 + $0x3b8] sm:$0xff]  ;;  %v142_v41 = vld [vmem:[%s1031_s1 + $0x3b0] sm:$0xff]  ;;  %v109_v44 = vld [vmem:[%s1031_s1 + $0x2a8] sm:$0xff] }
  0x24   :  { %224 = vmatmul.mubr.f32.vlgmr.msra.gmra.mxu0 %v16_v1  ;;  %293 = vmatprep.mubr.f32.mxu1 %v19_v2  ;;  %v95_v38 = vld [vmem:[%s1031_s1 + $0x238] sm:$0xff]  ;;  %v94_v42 = vld [vmem:[%s1031_s1 + $0x230] sm:$0xff]  ;;  %v141_v45 = vld [vmem:[%s1031_s1 + $0x3a8] sm:$0xff] }
  0x25   :  { %523 = vmatprep.subr.mxu0 %v119_v3  ;;  %558 = vmatprep.subr.mxu1 %v151_v4  ;;  %v127_v39 = vld [vmem:[%s1031_s1 + $0x338] sm:$0xff]  ;;  %v126_v43 = vld [vmem:[%s1031_s1 + $0x330] sm:$0xff]  ;;  %v93_v46 = vld [vmem:[%s1031_s1 + $0x228] sm:$0xff] }
  0x26   :  { %294 = vmatmul.mubr.f32.vlgmr.msra.gmra.mxu1 %v18_v5  ;;  %524 = vmatpush3.msra.mxu0 %v103_v6  ;;  %v125_v47 = vld [vmem:[%s1031_s1 + $0x328] sm:$0xff]  ;;  %v108_v48 = vld [vmem:[%s1031_s1 + $0x2a0] sm:$0xff]  ;;  %v107_v52 = vld [vmem:[%s1031_s1 + $0x298] sm:$0xff] }
  0x27   :  { %559 = vmatpush3.msra.mxu1 %v135_v7  ;;  %525 = vmatprep.subr.mxu0 %v118_v8  ;;  %v140_v49 = vld [vmem:[%s1031_s1 + $0x3a0] sm:$0xff]  ;;  %v139_v53 = vld [vmem:[%s1031_s1 + $0x398] sm:$0xff]  ;;  %v106_v56 = vld [vmem:[%s1031_s1 + $0x290] sm:$0xff]  ;;  %v8_v8 = vstv %s1033_s2 }
  0x28   :  { %560 = vmatprep.subr.mxu1 %v150_v9  ;;  %526 = vmatpush3.msra.mxu0 %v102_v10  ;;  %v92_v50 = vld [vmem:[%s1031_s1 + $0x220] sm:$0xff]  ;;  %v91_v54 = vld [vmem:[%s1031_s1 + $0x218] sm:$0xff]  ;;  %v138_v57 = vld [vmem:[%s1031_s1 + $0x390] sm:$0xff]  ;;  %9 = vst [vmem:[#allocation2] sm:$0x1] %v8_v8 }
  0x29   :  { %561 = vmatpush3.msra.mxu1 %v134_v11  ;;  %527 = vmatprep.subr.mxu0 %v117_v12  ;;  %v124_v51 = vld [vmem:[%s1031_s1 + $0x320] sm:$0xff]  ;;  %v123_v55 = vld [vmem:[%s1031_s1 + $0x318] sm:$0xff]  ;;  %v90_v58 = vld [vmem:[%s1031_s1 + $0x210] sm:$0xff] }
  0x2a   :  { %562 = vmatprep.subr.mxu1 %v149_v13  ;;  %528 = vmatpush3.msra.mxu0 %v101_v14  ;;  %v122_v59 = vld [vmem:[%s1031_s1 + $0x310] sm:$0xff]  ;;  %v105_v60 = vld [vmem:[%s1031_s1 + $0x288] sm:$0xff]  ;;  %v104_v0 = vld [vmem:[%s1031_s1 + $0x280] sm:$0xff] }
  0x2b   :  { %563 = vmatpush3.msra.mxu1 %v133_v15  ;;  %529 = vmatprep.subr.mxu0 %v116_v16  ;;  %v137_v61 = vld [vmem:[%s1031_s1 + $0x388] sm:$0xff]  ;;  %v136_v1 = vld [vmem:[%s1031_s1 + $0x380] sm:$0xff]  ;;  %v23_v5 = vld [vmem:[%s1032_s0 + $0x38] sm:$0xff] }
  0x2c   :  { %564 = vmatprep.subr.mxu1 %v148_v17  ;;  %530 = vmatpush3.msra.mxu0 %v100_v18  ;;  %v89_v62 = vld [vmem:[%s1031_s1 + $0x208] sm:$0xff]  ;;  %v88_v2 = vld [vmem:[%s1031_s1 + $0x200] sm:$0xff]  ;;  %v22_v7 = vld [vmem:[%s1032_s0 + $0x30] sm:$0xff] }
  0x2d   :  { %565 = vmatpush3.msra.mxu1 %v132_v19  ;;  %531 = vmatprep.subr.mxu0 %v115_v20  ;;  %v121_v63 = vld [vmem:[%s1031_s1 + $0x308] sm:$0xff]  ;;  %v120_v4 = vld [vmem:[%s1031_s1 + $0x300] sm:$0xff] }
  0x2e   :  { %566 = vmatprep.subr.mxu1 %v147_v21  ;;  %532 = vmatpush3.msra.mxu0 %v99_v22  ;;  %v21_v3 = vld [vmem:[%s1032_s0 + $0x28] sm:$0xff]  ;;  %v20_v6 = vld [vmem:[%s1032_s0 + $0x20] sm:$0xff] }
  0x2f   :  { %567 = vmatpush3.msra.mxu1 %v131_v23  ;;  %533 = vmatprep.subr.mxu0 %v114_v24  ;;  %v451_v13 = vld [vmem:[#allocation2] ss:$0 sm:$0xff] }
  0x30   :  { %568 = vmatprep.subr.mxu1 %v146_v25  ;;  %534 = vmatpush3.msra.mxu0 %v98_v26 }
  0x31   :  { %569 = vmatpush3.msra.mxu1 %v130_v27  ;;  %535 = vmatprep.subr.mxu0 %v113_v28 }
  0x32   :  { %570 = vmatprep.subr.mxu1 %v145_v29  ;;  %536 = vmatpush3.msra.mxu0 %v97_v30 }
  0x33   :  { %571 = vmatpush3.msra.mxu1 %v129_v31  ;;  %537 = vmatprep.subr.mxu0 %v112_v32 }
  0x34   :  { %572 = vmatprep.subr.mxu1 %v144_v33  ;;  %538 = vmatpush3.msra.mxu0 %v96_v34 }
  0x35   :  { %573 = vmatpush3.msra.mxu1 %v128_v35  ;;  %539 = vmatprep.subr.mxu0 %v111_v36 }
  0x36   :  { %574 = vmatprep.subr.mxu1 %v143_v37  ;;  %540 = vmatpush3.msra.mxu0 %v95_v38 }
  0x37   :  { %575 = vmatpush3.msra.mxu1 %v127_v39  ;;  %541 = vmatprep.subr.mxu0 %v110_v40 }
  0x38   :  { %576 = vmatprep.subr.mxu1 %v142_v41  ;;  %542 = vmatpush3.msra.mxu0 %v94_v42 }
  0x39   :  { %577 = vmatpush3.msra.mxu1 %v126_v43  ;;  %543 = vmatprep.subr.mxu0 %v109_v44 }
  0x3a   :  { %578 = vmatprep.subr.mxu1 %v141_v45  ;;  %544 = vmatpush3.msra.mxu0 %v93_v46 }
  0x3b   :  { %579 = vmatpush3.msra.mxu1 %v125_v47  ;;  %545 = vmatprep.subr.mxu0 %v108_v48 }
  0x3c   :  { %580 = vmatprep.subr.mxu1 %v140_v49  ;;  %546 = vmatpush3.msra.mxu0 %v92_v50 }
  0x3d   :  { %581 = vmatpush3.msra.mxu1 %v124_v51  ;;  %547 = vmatprep.subr.mxu0 %v107_v52 }
  0x3e   :  { %582 = vmatprep.subr.mxu1 %v139_v53  ;;  %548 = vmatpush3.msra.mxu0 %v91_v54 }
  0x3f   :  { %583 = vmatpush3.msra.mxu1 %v123_v55  ;;  %549 = vmatprep.subr.mxu0 %v106_v56 }
  0x40   :  { %584 = vmatprep.subr.mxu1 %v138_v57  ;;  %550 = vmatpush3.msra.mxu0 %v90_v58 }
  0x41   :  { %585 = vmatpush3.msra.mxu1 %v122_v59  ;;  %551 = vmatprep.subr.mxu0 %v105_v60 }
  0x42   :  { %586 = vmatprep.subr.mxu1 %v137_v61  ;;  %552 = vmatpush3.msra.mxu0 %v89_v62 }
  0x43   :  { %587 = vmatpush3.msra.mxu1 %v121_v63  ;;  %553 = vmatprep.subr.mxu0 %v104_v0 }
  0x44   :  { %588 = vmatprep.subr.mxu1 %v136_v1  ;;  %554 = vmatpush3.msra.mxu0 %v88_v2 }
  0x45   :  { %363 = vmatprep.mubr.f32.mxu0 %v21_v3  ;;  %589 = vmatpush3.msra.mxu1 %v120_v4 }
  0x46   :  { %433 = vmatprep.mubr.f32.mxu1 %v23_v5  ;;  %364 = vmatmul.mubr.f32.vlgmr.msra.gmra.mxu0 %v20_v6 }
  0x47   :  { %434 = vmatmul.mubr.f32.vlgmr.msra.gmra.mxu1 %v22_v7 }
  0xe4   :  { %v485_v9 = vpop.f32.mrf.mxu0 }
  0xe6   :  { %v520_v10 = vpop.f32.mrf.mxu1  ;;  %v486_v11 = vpop.f32.mrf.mxu0 }
  0xe7   :  { %v487_v12 = vadd.f32 %v486_v11, %v485_v9 }
  0xe8   :  { %v521_v14 = vpop.f32.mrf.mxu1 }
  0xe9   :  { %v226_v15 = vadd.f32 %v487_v12, %v451_v13  ;;  %v522_v16 = vadd.f32 %v521_v14, %v520_v10 }
  0xeb   :  { %v296_v21 = vadd.f32 %v522_v16, %v226_v15 }
 0x106   :  { %v555_v17 = vpop.f32.mrf.mxu0 }
 0x107   :  { %v590_v18 = vpop.f32.mrf.mxu1 }
 0x108   :  { %v556_v19 = vpop.f32.mrf.mxu0 }
 0x109   :  { %v591_v20 = vpop.f32.mrf.mxu1  ;;  %v557_v22 = vadd.f32 %v556_v19, %v555_v17 }
 0x10a   :  { %v592_v24 = vadd.f32 %v591_v20, %v590_v18 }
 0x10b   :  { %v366_v23 = vadd.f32 %v557_v22, %v296_v21 }
 0x10d   :  { %v436_v25 = vadd.f32 %v592_v24, %v366_v23 }
 0x10f   :  { %v452_v26 = vmul.f32 -1.442695, %v436_v25 }
 0x111   :  { %593 = vpow2.f32 %v452_v26 }
 0x11e   :  { %v594_v27 = vpop.eup %593 }
 0x11f   :  { %v442_v28 = vadd.f32 1.0, %v594_v27 }
 0x121   :  { %595 = vrcp.f32 %v442_v28 }
 0x12e   :  { %v596_v29 = vpop.eup %595 }
 0x12f   :  { %446 = vst.msk [vmem:[%s1034_s3] sm:$0xff] %vm445_vm0, %v596_v29 }

</bundles_post_ra>
